<compile_context>
chip_gen: v5e
topology: v5e:2x2
jax: 0.10.0
libtpu: 0.0.40
codegen_flags: <defaults>
</compile_context>

<pallas_src>
import jax
import jax.numpy as jnp
from jax.experimental import pallas as pl
from jax.experimental.pallas import tpu as pltpu

_LANE = 128
_SUBLANE = 8


def _cdiv(a, b):
    return -(-a // b)


def _round_up(a, b):
    return _cdiv(a, b) * b


def _make_single_tile_kernel(hw):
    """One grid step sees full rows: reduce, write, done (no scratch, no mask)."""
    inv_hw = 1.0 / float(hw)

    def kernel(x_ref, max_ref, avg_ref):
        x = x_ref[...]                                        # (tr, HW), native dtype
        max_ref[...] = jnp.max(x, axis=-1, keepdims=True).astype(max_ref.dtype)
        s = jnp.sum(x.astype(jnp.float32), axis=-1, keepdims=True)
        avg_ref[...] = (s * inv_hw).astype(avg_ref.dtype)

    return kernel


def _make_multi_tile_kernel(hw, hw_tile, needs_mask):
    """H*W tiled along an 'arbitrary' k axis; f32 running max/sum in scratch."""
    inv_hw = 1.0 / float(hw)

    def accumulate(x_for_max, x_for_sum, max_acc, sum_acc):
        tile_max = jnp.max(x_for_max, axis=-1, keepdims=True).astype(jnp.float32)
        tile_sum = jnp.sum(x_for_sum.astype(jnp.float32), axis=-1, keepdims=True)
        max_acc[...] = jnp.maximum(max_acc[...], tile_max)
        sum_acc[...] = sum_acc[...] + tile_sum

    def kernel(x_ref, max_ref, avg_ref, max_acc, sum_acc):
        k = pl.program_id(1)
        nk = pl.num_programs(1)

        @pl.when(k == 0)
        def _init():
            max_acc[...] = jnp.full_like(max_acc, -jnp.inf)
            sum_acc[...] = jnp.zeros_like(sum_acc)

        x = x_ref[...]                                        # (tr, hw_tile)

        if needs_mask:
            # Full tiles run unmasked; only the last (partial) tile pays for
            # the iota + compare + select.
            @pl.when(k < nk - 1)
            def _full_tile():
                accumulate(x, x, max_acc, sum_acc)

            @pl.when(k == nk - 1)
            def _tail_tile():
                lane = jax.lax.broadcasted_iota(jnp.int32, x.shape, 1)
                valid = (k * hw_tile + lane) < hw
                x_for_max = jnp.where(valid, x, -jnp.inf)     # neutral for max
                x_for_sum = jnp.where(valid, x, 0)            # neutral for sum
                accumulate(x_for_max, x_for_sum, max_acc, sum_acc)
        else:
            accumulate(x, x, max_acc, sum_acc)

        @pl.when(k == nk - 1)
        def _finalize():
            max_ref[...] = max_acc[...].astype(max_ref.dtype)
            avg_ref[...] = (sum_acc[...] * inv_hw).astype(avg_ref.dtype)

    return kernel


def adaptive_concat_pool2d(x, *, target_block_bytes=8 * 1024 * 1024):
    """x: (N, C, H, W) float -> (N, 2C, 1, 1) = concat([max_pool, avg_pool], dim=1)."""
    assert jnp.issubdtype(x.dtype, jnp.floating), "floating-point input expected"
    N, C, H, W = x.shape
    R, HW = N * C, H * W
    itemsize = jnp.dtype(x.dtype).itemsize

    # Free reshape: (N, C, H, W) is row-major contiguous, so rows of (R, HW)
    # are exactly the per-(image, channel) feature maps.  No padding copy.
    x_rows = x.reshape(R, HW)

    # ---- spatial (lane) tile -------------------------------------------------
    max_hw_tile = max(_LANE,
                      (target_block_bytes // (_SUBLANE * itemsize)) // _LANE * _LANE)
    if HW <= max_hw_tile:
        hw_tile, num_k = HW, 1                # full-dim block: no pad, no mask, k == 1
    else:
        hw_tile, num_k = max_hw_tile, _cdiv(HW, max_hw_tile)

    # ---- row (sublane) tile ----------------------------------------------------
    if R < _SUBLANE:
        tr = R                                # full-dim block (exempt from x8 rule)
    else:
        tr = min(R, max(_SUBLANE,
                        (target_block_bytes // (hw_tile * itemsize))
                        // _SUBLANE * _SUBLANE))
        tr = (tr // _SUBLANE) * _SUBLANE
        # Give the 'parallel' row axis >=2 blocks when possible so a megacore
        # (v7x, 2 TCs) can split it.  (Single-row-block + huge-HW inputs would
        # need a cross-core combine to use both cores; not worth it here.)
        if _cdiv(R, tr) == 1 and R > _SUBLANE:
            tr = max(_SUBLANE, min(tr, _round_up(_cdiv(R, 2), _SUBLANE)))
    num_r = _cdiv(R, tr)

    # Double-buffered input block + tiny outputs/scratch; keep headroom on
    # v7x's 64 MiB VMEM while lifting v5e's 16 MiB scoped default.
    block_bytes = tr * hw_tile * itemsize
    vmem_limit = int(min(48 * 1024 * 1024,
                         max(32 * 1024 * 1024, 3 * block_bytes + (2 << 20))))

    out_shapes = (jax.ShapeDtypeStruct((R, 1), x.dtype),
                  jax.ShapeDtypeStruct((R, 1), x.dtype))
    cost = pl.CostEstimate(flops=2 * R * HW, transcendentals=0,
                           bytes_accessed=R * HW * itemsize + 2 * R * itemsize)

    if num_k == 1:
        mx, av = pl.pallas_call(
            _make_single_tile_kernel(HW),
            out_shape=out_shapes,
            grid_spec=pltpu.PrefetchScalarGridSpec(
                num_scalar_prefetch=0,
                grid=(num_r,),
                in_specs=[pl.BlockSpec((tr, hw_tile), lambda i: (i, 0))],
                out_specs=[pl.BlockSpec((tr, 1), lambda i: (i, 0)),
                           pl.BlockSpec((tr, 1), lambda i: (i, 0))],
            ),
            compiler_params=pltpu.CompilerParams(
                dimension_semantics=("parallel",),
                vmem_limit_bytes=vmem_limit),
            cost_estimate=cost,
        )(x_rows)
    else:
        mx, av = pl.pallas_call(
            _make_multi_tile_kernel(HW, hw_tile, needs_mask=(HW % hw_tile != 0)),
            out_shape=out_shapes,
            grid_spec=pltpu.PrefetchScalarGridSpec(
                num_scalar_prefetch=0,
                grid=(num_r, num_k),                          # reduction axis last
                in_specs=[pl.BlockSpec((tr, hw_tile), lambda i, k: (i, k))],
                out_specs=[pl.BlockSpec((tr, 1), lambda i, k: (i, 0)),
                           pl.BlockSpec((tr, 1), lambda i, k: (i, 0))],
                scratch_shapes=[pltpu.VMEM((tr, 1), jnp.float32),   # running max
                                pltpu.VMEM((tr, 1), jnp.float32)],  # running sum
            ),
            compiler_params=pltpu.CompilerParams(
                dimension_semantics=("parallel", "arbitrary"),
                vmem_limit_bytes=vmem_limit),
            cost_estimate=cost,
        )(x_rows)

    mx = mx.reshape(N, C)
    av = av.reshape(N, C)
    # torch.cat([max_pool, avg_pool], dim=1)
    return jnp.concatenate([mx, av], axis=1).reshape(N, 2 * C, 1, 1)


def _reference(x):
    ref_max = jnp.max(x, axis=(2, 3), keepdims=True)
    ref_avg = jnp.mean(x, axis=(2, 3), keepdims=True)
    return jnp.concatenate([ref_max, ref_avg], axis=1)


if __name__ == "__main__":
    key = jax.random.PRNGKey(0)

    # Primary test shape (matches the module spec scale).
    N, C, H, W = 2, 4, 16, 16
    x = jax.random.normal(key, (N, C, H, W), dtype=jnp.float32)
    y = adaptive_concat_pool2d(x)
    jax.block_until_ready(y)
    ref = _reference(x)
    assert y.shape == (N, 2 * C, 1, 1), y.shape
    assert jnp.allclose(y, ref, atol=1e-5, rtol=1e-5)

    # Ragged row count (N*C = 40 -> partial last row block) + 7x7 CNN head
    # (HW = 49 full-dim lane block, no padding).
    x2 = jax.random.normal(jax.random.PRNGKey(1), (10, 4, 7, 7), dtype=jnp.float32)
    y2 = adaptive_concat_pool2d(x2)
    jax.block_until_ready(y2)
    assert y2.shape == (10, 8, 1, 1), y2.shape
    assert jnp.allclose(y2, _reference(x2), atol=1e-5, rtol=1e-5)

    # Force the multi-tile reduction path (tiny block budget) with a ragged
    # spatial tail (33*33 = 1089 = 2*512 + 65) to exercise the in-kernel mask.
    x3 = jax.random.normal(jax.random.PRNGKey(2), (2, 4, 33, 33), dtype=jnp.float32)
    y3 = adaptive_concat_pool2d(x3, target_block_bytes=16 * 1024)
    jax.block_until_ready(y3)
    assert y3.shape == (2, 8, 1, 1), y3.shape
    assert jnp.allclose(y3, _reference(x3), atol=1e-5, rtol=1e-5)

    print("KERNEL_OK")
</pallas_src>

<mosaic_0001>
module attributes {stable_mosaic.version = 11 : i64} {
  func.func @kernel(%arg0: i32, %arg1: memref<8x256xf32, #tpu.memory_space<vmem>>, %arg2: memref<8x1xf32, #tpu.memory_space<vmem>>, %arg3: memref<8x1xf32, #tpu.memory_space<vmem>>) attributes {dimension_semantics = [#tpu.dimension_semantics<parallel>], iteration_bounds = array<i64: 1>, scalar_prefetch = 0 : i64, scratch_operands = 0 : i64, tpu.core_type = #tpu.core_type<tc>, window_params = [{transform_indices = @transform_0, window_bounds = array<i64: 8, 256>}, {transform_indices = @transform_1, window_bounds = array<i64: 8, 1>}, {transform_indices = @transform_2, window_bounds = array<i64: 8, 1>}]} {
    %c0 = arith.constant 0 : index
    %c0_0 = arith.constant 0 : index
    %0 = vector.load %arg1[%c0, %c0_0] : memref<8x256xf32, #tpu.memory_space<vmem>>, vector<8x256xf32>
    %cst = arith.constant dense<0xFF800000> : vector<8xf32>
    %1 = vector.multi_reduction <maximumf>, %0, %cst [1] : vector<8x256xf32> to vector<8xf32>
    %2 = vector.shape_cast %1 : vector<8xf32> to vector<8x1xf32>
    %c0_1 = arith.constant 0 : index
    %c0_2 = arith.constant 0 : index
    %3 = vector.load %arg2[%c0_1, %c0_2] : memref<8x1xf32, #tpu.memory_space<vmem>>, vector<8x1xf32>
    tpu.vector_store %arg2[%c0_1, %c0_2], %2 {strides = array<i32>} : memref<8x1xf32, #tpu.memory_space<vmem>>, vector<8x1xf32>,
    %cst_3 = arith.constant dense<0.000000e+00> : vector<8xf32>
    %4 = vector.multi_reduction <add>, %0, %cst_3 [1] : vector<8x256xf32> to vector<8xf32>
    %5 = vector.shape_cast %4 : vector<8xf32> to vector<8x1xf32>
    %cst_4 = arith.constant 3.906250e-03 : f32
    %6 = vector.broadcast %cst_4 : f32 to vector<8x1xf32>
    %7 = arith.mulf %5, %6 : vector<8x1xf32>
    %c0_5 = arith.constant 0 : index
    %c0_6 = arith.constant 0 : index
    %8 = vector.load %arg3[%c0_5, %c0_6] : memref<8x1xf32, #tpu.memory_space<vmem>>, vector<8x1xf32>
    tpu.vector_store %arg3[%c0_5, %c0_6], %7 {strides = array<i32>} : memref<8x1xf32, #tpu.memory_space<vmem>>, vector<8x1xf32>,
    return
  }
  func.func @transform_0(%arg0: i32) -> (i32, i32) {
    %c0_i32 = arith.constant 0 : i32
    %c0_i32_0 = arith.constant 0 : i32
    return %arg0, %c0_i32 : i32, i32
  }
  func.func @transform_1(%arg0: i32) -> (i32, i32) {
    %c0_i32 = arith.constant 0 : i32
    %c0_i32_0 = arith.constant 0 : i32
    return %arg0, %c0_i32 : i32, i32
  }
  func.func @transform_2(%arg0: i32) -> (i32, i32) {
    %c0_i32 = arith.constant 0 : i32
    %c0_i32_0 = arith.constant 0 : i32
    return %arg0, %c0_i32 : i32, i32
  }
}

</mosaic_0001>

<bundles_post_ra>
// kernel: tpu_custom_call.1
= control target key start
LH: loop header
LB: loop body
LE: loop exit
PB: predicated region body
PF: predicated region fallthrough
CT: control target
= control target key end

     0   :  { %8 = vsyncpa [#allocation3], 0  ;;  %s72_s12 = smov [#allocation2]   ;;  %s97_s0 = inlined_call_operand.hbm [shape: f32[8,256], index: 0, kind: input, shape index: {}]   ;;  %s98_s1 = inlined_call_operand.vmem [shape: f32[8,1], index: 1, kind: output, shape index: {0}]   ;;  %s99_s2 = inlined_call_operand.vmem [shape: f32[8,1], index: 2, kind: output, shape index: {1}]  }
   0x1   :  { %s14_s11 = sshll.u32 %s97_s0, 4  ;;  %s16_s13 = sshll.u32 %s72_s12, 4  ;;  %s15_s11 = int_to_ptr.hbm [resolvable:$true] %s14_s11  ;;  %s17_s13 = int_to_ptr.vmem [resolvable:$true] %s16_s13 }
   0x2   :  { %19 = dma.hbm_to_vmem [thread:$0]  %s15_s11, 256, %s17_s13, [#allocation3]  }
   0x3   :  { %70 = dma.done.wait [#allocation3], 256  }
   0x4   :  { %71 = vsyncadd [#allocation3], 4294967040  ;;  %v24_v0 = vld [vmem:[#allocation2] sm:$0xff]  ;;  %v25_v1 = vld [vmem:[#allocation2 + $0x8] sm:$0xff]  ;;  %vm29_vm0 = vcmask 7168  }
   0x5   :  { %v31_v2 = vadd.f32 %v25_v1, %v24_v0  ;;  %v26_v3 = vmax.f32 %v24_v0, %v25_v1 }
   0x7   :  { %32 = vadd.xlane.f32.xlu0 %v31_v2 }
   0xf   :  { %27 = vmax.xlane.f32.xlu0 %v26_v3 }
  0x7a   :  { %v33_v4 = vpop.xlane.xlu0 %32 }
  0x7b   :  { %v34_v5 = vmul.f32 0.00390625, %v33_v4 }
  0x7d   :  { %35 = vst.msk [vmem:[%s99_s2] sm:$0xff] %vm29_vm0, %v34_v5 }
  0x82   :  { %v28_v6 = vpop.xlane.xlu0 %27 }
  0x83   :  { %30 = vst.msk [vmem:[%s98_s1] sm:$0xff] %vm29_vm0, %v28_v6 }
  0x84   :  { %44 = vsyncpa [#allocation3], 1 }

</bundles_post_ra>
